<compile_context>
chip_gen: v5e
topology: v5e:2x2
jax: 0.10.0
libtpu: 0.0.40
codegen_flags: <defaults>
</compile_context>

<pallas_src>
import jax
import jax.numpy as jnp
from jax.experimental import pallas as pl
from jax.experimental.pallas import tpu as pltpu


def _round_up(x: int, m: int) -> int:
    return ((x + m - 1) // m) * m


def _make_net_kernel(n_layers: int):
    """Fused MLP kernel: n_layers Linear layers, ReLU on all but the last."""

    def kernel(*refs):
        x_ref = refs[0]
        o_ref = refs[-1]
        # MXU is bf16-native: cast activations in-kernel (free VPU work),
        # accumulate in f32.
        h = x_ref[...].astype(jnp.bfloat16)
        for i in range(n_layers):
            w = refs[1 + 2 * i][...]            # bf16 weights (resident in VMEM)
            b = refs[2 + 2 * i][...]            # f32 bias
            h32 = jnp.dot(h, w, preferred_element_type=jnp.float32) + b
            if i < n_layers - 1:                # activation_func=F.relu on hidden layers
                h = jnp.maximum(h32, 0.0).astype(jnp.bfloat16)
            else:
                h = h32
        o_ref[...] = h.astype(o_ref.dtype)

    return kernel


def net_forward(x, params, *, batch_tile=4096):
    """Run the fused Net forward pass.

    x:      [B, D_in] float32
    params: list of (W, b) with W: [D_in_i, D_out_i], b: [1, D_out_i]
    batch_tile: rows per grid step (sweep 2048-8192 for large B).
    """
    B, D_in = x.shape
    n_layers = len(params)
    out_dim = params[-1][0].shape[1]

    # --- batch tile: multiple of 8 (or == B), keep >= 2 grid steps if possible
    if B <= 8:
        tb = B
    else:
        tb = min(_round_up(batch_tile, 8), _round_up(B, 8))
        half = _round_up(-(-B // 2), 8)          # ceil(B/2) rounded to sublanes
        tb = min(tb, max(8, half))               # >= 2 steps -> both v7x TCs work

    # --- weights in bf16 (tiny arrays; cast cost negligible), biases in f32 ---
    flat_params = []
    in_specs = [pl.BlockSpec((tb, D_in), lambda i: (i, 0))]
    for (w, b) in params:
        wb = w.astype(jnp.bfloat16)
        bf = b.astype(jnp.float32)
        in_specs.append(pl.BlockSpec(wb.shape, lambda i: (0, 0)))   # resident
        in_specs.append(pl.BlockSpec(bf.shape, lambda i: (0, 0)))   # resident
        flat_params += [wb, bf]

    # Unpadded, lane-correct output: last block dim equals full array dim.
    out_spec = pl.BlockSpec((tb, out_dim), lambda i: (i, 0))

    # Advisory cost hint (real, unpadded work).
    flops = 2 * B * sum(w.shape[0] * w.shape[1] for w, _ in params)
    bytes_accessed = (
        B * D_in * x.dtype.itemsize                         # x read (f32)
        + B * out_dim * 4                                   # out write (f32)
        + sum(w.size * 2 + b.size * 4 for w, b in params)   # bf16 W, f32 b (once)
    )

    kernel = _make_net_kernel(n_layers)

    out = pl.pallas_call(
        kernel,
        out_shape=jax.ShapeDtypeStruct((B, out_dim), jnp.float32),
        grid_spec=pltpu.PrefetchScalarGridSpec(
            num_scalar_prefetch=0,
            grid=(pl.cdiv(B, tb),),
            in_specs=in_specs,
            out_specs=out_spec,
        ),
        compiler_params=pltpu.CompilerParams(
            dimension_semantics=("parallel",)),
        cost_estimate=pl.CostEstimate(
            flops=flops, transcendentals=0, bytes_accessed=bytes_accessed),
    )(x, *flat_params)

    return out


def init_net_params(key,
                    input_dim=32,
                    base_hidden_shapes=(32, 32),
                    append_hidden_shapes=(32,),
                    output_shape=4):
    """Deterministic synthetic parameters matching Net.__init__ layer shapes.

    base_hidden_shapes -> MLPBase Linear layers (fan-in style init)
    append_hidden_shapes -> append_fc layers (basic_init)
    last -> uniform_init (small uniform), zero bias
    """
    params = []
    dims = [input_dim] + list(base_hidden_shapes) + list(append_hidden_shapes)
    for d_in, d_out in zip(dims[:-1], dims[1:]):
        key, kw, kb = jax.random.split(key, 3)
        scale = 1.0 / jnp.sqrt(jnp.float32(d_in))
        w = jax.random.uniform(kw, (d_in, d_out), jnp.float32, -scale, scale)
        b = jax.random.uniform(kb, (1, d_out), jnp.float32, -scale, scale)
        params.append((w, b))
    key, kw = jax.random.split(key)
    w_last = jax.random.uniform(kw, (dims[-1], output_shape), jnp.float32,
                                -3e-3, 3e-3)
    b_last = jnp.zeros((1, output_shape), jnp.float32)
    params.append((w_last, b_last))
    return params


def net_forward_ref_f32(x, params):
    """Pure-JAX f32 reference mirroring the PyTorch forward."""
    h = x
    for i, (w, b) in enumerate(params):
        h = h @ w + b
        if i < len(params) - 1:
            h = jnp.maximum(h, 0.0)
    return h


def net_forward_ref_bf16ops(x, params):
    """Reference with the kernel's exact numerics: bf16 operands, f32 accumulate."""
    h = x
    for i, (w, b) in enumerate(params):
        h = jnp.dot(h.astype(jnp.bfloat16), w.astype(jnp.bfloat16),
                    preferred_element_type=jnp.float32) + b.astype(jnp.float32)
        if i < len(params) - 1:
            h = jnp.maximum(h, 0.0)
    return h


if __name__ == "__main__":
    key = jax.random.PRNGKey(0)
    k_x, k_p = jax.random.split(key)

    B, D_in = 8, 32
    x = jax.random.normal(k_x, (B, D_in), jnp.float32)
    params = init_net_params(k_p, input_dim=D_in,
                             base_hidden_shapes=(32, 32),
                             append_hidden_shapes=(32,),
                             output_shape=4)

    out = net_forward(x, params)
    out = jax.block_until_ready(out)

    ref_bf16 = net_forward_ref_bf16ops(x, params)   # same operand dtypes as kernel
    ref_f32 = net_forward_ref_f32(x, params)        # module (f32) semantics

    assert out.shape == (B, 4), out.shape
    assert jnp.allclose(out, ref_bf16, atol=1e-4, rtol=1e-4), \
        "mismatch vs bf16-operand reference"
    assert jnp.allclose(out, ref_f32, atol=5e-2, rtol=5e-2), \
        "mismatch vs f32 reference"

    print("KERNEL_OK")
</pallas_src>

<mosaic_0001>
module attributes {stable_mosaic.version = 11 : i64} {
  func.func @kernel(%arg0: i32, %arg1: memref<8x32xf32, #tpu.memory_space<vmem>>, %arg2: memref<32x32xbf16, #tpu.memory_space<vmem>>, %arg3: memref<1x32xf32, #tpu.memory_space<vmem>>, %arg4: memref<32x32xbf16, #tpu.memory_space<vmem>>, %arg5: memref<1x32xf32, #tpu.memory_space<vmem>>, %arg6: memref<32x32xbf16, #tpu.memory_space<vmem>>, %arg7: memref<1x32xf32, #tpu.memory_space<vmem>>, %arg8: memref<32x4xbf16, #tpu.memory_space<vmem>>, %arg9: memref<1x4xf32, #tpu.memory_space<vmem>>, %arg10: memref<8x4xf32, #tpu.memory_space<vmem>>) attributes {dimension_semantics = [#tpu.dimension_semantics<parallel>], iteration_bounds = array<i64: 1>, scalar_prefetch = 0 : i64, scratch_operands = 0 : i64, tpu.core_type = #tpu.core_type<tc>, window_params = [{transform_indices = @transform_0, window_bounds = array<i64: 8, 32>}, {pipeline_mode = #tpu.pipeline_mode<synchronous>, transform_indices = @transform_1, window_bounds = array<i64: 32, 32>}, {pipeline_mode = #tpu.pipeline_mode<synchronous>, transform_indices = @transform_2, window_bounds = array<i64: 1, 32>}, {pipeline_mode = #tpu.pipeline_mode<synchronous>, transform_indices = @transform_3, window_bounds = array<i64: 32, 32>}, {pipeline_mode = #tpu.pipeline_mode<synchronous>, transform_indices = @transform_4, window_bounds = array<i64: 1, 32>}, {pipeline_mode = #tpu.pipeline_mode<synchronous>, transform_indices = @transform_5, window_bounds = array<i64: 32, 32>}, {pipeline_mode = #tpu.pipeline_mode<synchronous>, transform_indices = @transform_6, window_bounds = array<i64: 1, 32>}, {pipeline_mode = #tpu.pipeline_mode<synchronous>, transform_indices = @transform_7, window_bounds = array<i64: 32, 4>}, {pipeline_mode = #tpu.pipeline_mode<synchronous>, transform_indices = @transform_8, window_bounds = array<i64: 1, 4>}, {transform_indices = @transform_9, window_bounds = array<i64: 8, 4>}]} {
    %c0 = arith.constant 0 : index
    %c0_0 = arith.constant 0 : index
    %0 = vector.load %arg1[%c0, %c0_0] : memref<8x32xf32, #tpu.memory_space<vmem>>, vector<8x32xf32>
    %1 = arith.truncf %0 : vector<8x32xf32> to vector<8x32xbf16>
    %c0_1 = arith.constant 0 : index
    %c0_2 = arith.constant 0 : index
    %2 = vector.load %arg2[%c0_1, %c0_2] : memref<32x32xbf16, #tpu.memory_space<vmem>>, vector<32x32xbf16>
    %c0_3 = arith.constant 0 : index
    %c0_4 = arith.constant 0 : index
    %3 = vector.load %arg3[%c0_3, %c0_4] : memref<1x32xf32, #tpu.memory_space<vmem>>, vector<1x32xf32>
    %cst = arith.constant dense<0.000000e+00> : vector<8x32xf32>
    %4 = tpu.matmul %1, %2, %cst {dimension_numbers = #tpu.dot_dimension_numbers<[1], [0], [0], [1], [0, 0, 1, 1], [], []>} : vector<8x32xbf16>, vector<32x32xbf16>, vector<8x32xf32> -> vector<8x32xf32>
    %5 = vector.broadcast %3 : vector<1x32xf32> to vector<8x32xf32>
    %6 = arith.addf %4, %5 : vector<8x32xf32>
    %cst_5 = arith.constant 0.000000e+00 : f32
    %7 = vector.broadcast %cst_5 : f32 to vector<8x32xf32>
    %8 = arith.maximumf %6, %7 : vector<8x32xf32>
    %9 = arith.truncf %8 : vector<8x32xf32> to vector<8x32xbf16>
    %c0_6 = arith.constant 0 : index
    %c0_7 = arith.constant 0 : index
    %10 = vector.load %arg4[%c0_6, %c0_7] : memref<32x32xbf16, #tpu.memory_space<vmem>>, vector<32x32xbf16>
    %c0_8 = arith.constant 0 : index
    %c0_9 = arith.constant 0 : index
    %11 = vector.load %arg5[%c0_8, %c0_9] : memref<1x32xf32, #tpu.memory_space<vmem>>, vector<1x32xf32>
    %cst_10 = arith.constant dense<0.000000e+00> : vector<8x32xf32>
    %12 = tpu.matmul %9, %10, %cst_10 {dimension_numbers = #tpu.dot_dimension_numbers<[1], [0], [0], [1], [0, 0, 1, 1], [], []>} : vector<8x32xbf16>, vector<32x32xbf16>, vector<8x32xf32> -> vector<8x32xf32>
    %13 = vector.broadcast %11 : vector<1x32xf32> to vector<8x32xf32>
    %14 = arith.addf %12, %13 : vector<8x32xf32>
    %cst_11 = arith.constant 0.000000e+00 : f32
    %15 = vector.broadcast %cst_11 : f32 to vector<8x32xf32>
    %16 = arith.maximumf %14, %15 : vector<8x32xf32>
    %17 = arith.truncf %16 : vector<8x32xf32> to vector<8x32xbf16>
    %c0_12 = arith.constant 0 : index
    %c0_13 = arith.constant 0 : index
    %18 = vector.load %arg6[%c0_12, %c0_13] : memref<32x32xbf16, #tpu.memory_space<vmem>>, vector<32x32xbf16>
    %c0_14 = arith.constant 0 : index
    %c0_15 = arith.constant 0 : index
    %19 = vector.load %arg7[%c0_14, %c0_15] : memref<1x32xf32, #tpu.memory_space<vmem>>, vector<1x32xf32>
    %cst_16 = arith.constant dense<0.000000e+00> : vector<8x32xf32>
    %20 = tpu.matmul %17, %18, %cst_16 {dimension_numbers = #tpu.dot_dimension_numbers<[1], [0], [0], [1], [0, 0, 1, 1], [], []>} : vector<8x32xbf16>, vector<32x32xbf16>, vector<8x32xf32> -> vector<8x32xf32>
    %21 = vector.broadcast %19 : vector<1x32xf32> to vector<8x32xf32>
    %22 = arith.addf %20, %21 : vector<8x32xf32>
    %cst_17 = arith.constant 0.000000e+00 : f32
    %23 = vector.broadcast %cst_17 : f32 to vector<8x32xf32>
    %24 = arith.maximumf %22, %23 : vector<8x32xf32>
    %25 = arith.truncf %24 : vector<8x32xf32> to vector<8x32xbf16>
    %c0_18 = arith.constant 0 : index
    %c0_19 = arith.constant 0 : index
    %26 = vector.load %arg8[%c0_18, %c0_19] : memref<32x4xbf16, #tpu.memory_space<vmem>>, vector<32x4xbf16>
    %c0_20 = arith.constant 0 : index
    %c0_21 = arith.constant 0 : index
    %27 = vector.load %arg9[%c0_20, %c0_21] : memref<1x4xf32, #tpu.memory_space<vmem>>, vector<1x4xf32>
    %cst_22 = arith.constant dense<0.000000e+00> : vector<8x4xf32>
    %28 = tpu.matmul %25, %26, %cst_22 {dimension_numbers = #tpu.dot_dimension_numbers<[1], [0], [0], [1], [0, 0, 1, 1], [], []>} : vector<8x32xbf16>, vector<32x4xbf16>, vector<8x4xf32> -> vector<8x4xf32>
    %29 = vector.broadcast %27 : vector<1x4xf32> to vector<8x4xf32>
    %30 = arith.addf %28, %29 : vector<8x4xf32>
    %c0_23 = arith.constant 0 : index
    %c0_24 = arith.constant 0 : index
    %31 = vector.load %arg10[%c0_23, %c0_24] : memref<8x4xf32, #tpu.memory_space<vmem>>, vector<8x4xf32>
    tpu.vector_store %arg10[%c0_23, %c0_24], %30 {strides = array<i32>} : memref<8x4xf32, #tpu.memory_space<vmem>>, vector<8x4xf32>,
    return
  }
  func.func @transform_0(%arg0: i32) -> (i32, i32) {
    %c0_i32 = arith.constant 0 : i32
    %c0_i32_0 = arith.constant 0 : i32
    return %arg0, %c0_i32 : i32, i32
  }
  func.func @transform_1(%arg0: i32) -> (i32, i32) {
    %c0_i32 = arith.constant 0 : i32
    %c0_i32_0 = arith.constant 0 : i32
    %c0_i32_1 = arith.constant 0 : i32
    return %c0_i32, %c0_i32_0 : i32, i32
  }
  func.func @transform_2(%arg0: i32) -> (i32, i32) {
    %c0_i32 = arith.constant 0 : i32
    %c0_i32_0 = arith.constant 0 : i32
    %c0_i32_1 = arith.constant 0 : i32
    return %c0_i32, %c0_i32_0 : i32, i32
  }
  func.func @transform_3(%arg0: i32) -> (i32, i32) {
    %c0_i32 = arith.constant 0 : i32
    %c0_i32_0 = arith.constant 0 : i32
    %c0_i32_1 = arith.constant 0 : i32
    return %c0_i32, %c0_i32_0 : i32, i32
  }
  func.func @transform_4(%arg0: i32) -> (i32, i32) {
    %c0_i32 = arith.constant 0 : i32
    %c0_i32_0 = arith.constant 0 : i32
    %c0_i32_1 = arith.constant 0 : i32
    return %c0_i32, %c0_i32_0 : i32, i32
  }
  func.func @transform_5(%arg0: i32) -> (i32, i32) {
    %c0_i32 = arith.constant 0 : i32
    %c0_i32_0 = arith.constant 0 : i32
    %c0_i32_1 = arith.constant 0 : i32
    return %c0_i32, %c0_i32_0 : i32, i32
  }
  func.func @transform_6(%arg0: i32) -> (i32, i32) {
    %c0_i32 = arith.constant 0 : i32
    %c0_i32_0 = arith.constant 0 : i32
    %c0_i32_1 = arith.constant 0 : i32
    return %c0_i32, %c0_i32_0 : i32, i32
  }
  func.func @transform_7(%arg0: i32) -> (i32, i32) {
    %c0_i32 = arith.constant 0 : i32
    %c0_i32_0 = arith.constant 0 : i32
    %c0_i32_1 = arith.constant 0 : i32
    return %c0_i32, %c0_i32_0 : i32, i32
  }
  func.func @transform_8(%arg0: i32) -> (i32, i32) {
    %c0_i32 = arith.constant 0 : i32
    %c0_i32_0 = arith.constant 0 : i32
    %c0_i32_1 = arith.constant 0 : i32
    return %c0_i32, %c0_i32_0 : i32, i32
  }
  func.func @transform_9(%arg0: i32) -> (i32, i32) {
    %c0_i32 = arith.constant 0 : i32
    %c0_i32_0 = arith.constant 0 : i32
    return %arg0, %c0_i32 : i32, i32
  }
}

</mosaic_0001>

<bundles_post_ra>
// kernel: tpu_custom_call.1
= control target key start
LH: loop header
LB: loop body
LE: loop exit
PB: predicated region body
PF: predicated region fallthrough
CT: control target
= control target key end

     0   :  { %14 = vsyncpa [#allocation3], 0  ;;  %s463_s0 = inlined_call_operand.hbm [shape: f32[8,32], index: 0, kind: input, shape index: {}]   ;;  %s464_s1 = inlined_call_operand.vmem [shape: bf16[32,32], index: 1, kind: input, shape index: {}]   ;;  %s465_s2 = inlined_call_operand.vmem [shape: f32[1,32], index: 2, kind: input, shape index: {}]   ;;  %s466_s3 = inlined_call_operand.hbm [shape: bf16[32,32], index: 3, kind: input, shape index: {}]   ;;  %s467_s4 = inlined_call_operand.vmem [shape: f32[1,32], index: 4, kind: input, shape index: {}]   ;;  %s468_s5 = inlined_call_operand.hbm [shape: bf16[32,32], index: 5, kind: input, shape index: {}]   ;;  %s469_s6 = inlined_call_operand.vmem [shape: f32[1,32], index: 6, kind: input, shape index: {}]   ;;  %s470_s7 = inlined_call_operand.vmem [shape: bf16[32,4], index: 7, kind: input, shape index: {}]   ;;  %s471_s8 = inlined_call_operand.vmem [shape: f32[1,4], index: 8, kind: input, shape index: {}]   ;;  %s472_s9 = inlined_call_operand.vmem [shape: f32[8,4], index: 9, kind: output, shape index: {}]  }
   0x1   :  { %15 = vsyncpa [#allocation5], 0  ;;  %s35_s11 = sshll.u32 %s466_s3, 4  ;;  %s368_s12 = smov [#allocation4]   ;;  %s36_s11 = int_to_ptr.hbm [resolvable:$true] %s35_s11 }
   0x2   :  { %s37_s13 = sshll.u32 %s368_s12, 4  ;;  %s21_s16 = sshll.u32 %s463_s0, 4  ;;  %s38_s13 = int_to_ptr.vmem [resolvable:$true] %s37_s13  ;;  %s22_s16 = int_to_ptr.hbm [resolvable:$true] %s21_s16 }
   0x3   :  { %s369_s17 = smov 64   ;;  %s370_s18 = smov 4  }
   0x4   :  { %43 = dma.hbm_to_vmem [thread:$0]  %s36_s11, 256, %s38_s13, [#allocation5], %s369_s17, %s369_s17, %s370_s18  }
   0x5   :  { %s371_s19 = smov [#allocation2]   ;;  %s50_s23 = sshll.u32 %s468_s5, 4  ;;  %s51_s23 = int_to_ptr.hbm [resolvable:$true] %s50_s23 }
   0x6   :  { %s23_s20 = sshll.u32 %s371_s19, 4  ;;  %s372_s3 = smov [#allocation6]   ;;  %s24_s20 = int_to_ptr.vmem [resolvable:$true] %s23_s20 }
   0x7   :  { %26 = dma.hbm_to_vmem [thread:$0]  %s22_s16, 128, %s24_s20, [#allocation3]  }
   0x8   :  { %s52_s24 = sshll.u32 %s372_s3, 4  ;;  %s53_s24 = int_to_ptr.vmem [resolvable:$true] %s52_s24 }
   0x9   :  { %58 = dma.hbm_to_vmem [thread:$0]  %s51_s23, 256, %s53_s24, [#allocation5], %s369_s17, %s369_s17, %s370_s18  }
   0xa   :  { %364 = dma.done.wait [#allocation3], 128  }
   0xb   :  { %365 = vsyncadd [#allocation3], 4294967168 }
   0xc   :  { %366 = dma.done.wait [#allocation5], 512  }
   0xd   :  { %367 = vsyncadd [#allocation5], 4294966784  ;;  %v276_v0 = vld [vmem:[%s464_s1 + $0x8] sm:$0xff]  ;;  %v275_v1 = vld [vmem:[%s464_s1] sm:$0xff]  ;;  %vm100_vm0 = vcmask 261120   ;;  %vm231_vm1 = vcmask 31744  }
   0xe   :  { %110 = vmatpush.bf16.msra.mxu0 %v276_v0  ;;  %v78_v2 = vld [vmem:[#allocation2] sm:$0xff]  ;;  %v278_v4 = vld [vmem:[#allocation4 + $0x8] sm:$0xff]  ;;  %v277_v5 = vld [vmem:[#allocation4] sm:$0xff] }
   0xf   :  { %v79_v3 = vpack.c.bf16 %v78_v2, %v78_v2  ;;  %148 = vmatpush.bf16.msra.mxu1 %v278_v4  ;;  %v288_v6 = vld [vmem:[%s465_s2] ss:$0 sm:$0xff]  ;;  %v279_v13 = vld [vmem:[#allocation6] sm:$0xff]  ;;  %v282_v20 = vld [vmem:[%s470_s7 + $0x8] sm:$0xff] }
  0x10   :  { %v280_v12 = vld [vmem:[#allocation6 + $0x8] sm:$0xff]  ;;  %224 = vmatpush.bf16.msra.mxu3 %v282_v20 }
  0x11   :  { %186 = vmatpush.bf16.msra.mxu2 %v280_v12  ;;  %v289_v14 = vld [vmem:[%s467_s4] ss:$0 sm:$0xff] }
  0x12   :  { %111 = vmatpush.bf16.msra.mxu0 %v275_v1  ;;  %v281_v21 = vld [vmem:[%s470_s7] sm:$0xff] }
  0x13   :  { %149 = vmatpush.bf16.msra.mxu1 %v277_v5  ;;  %v290_v22 = vld [vmem:[%s469_s6] ss:$0 sm:$0xff] }
  0x14   :  { %225 = vmatpush.bf16.msra.mxu3 %v281_v21  ;;  %v291_v28 = vld [vmem:[%s471_s8] ss:$0 sm:$0xff] }
  0x15   :  { %247 = vmatmul.msk.bf16.vlgmr.msra.gmra.mxu0 %vm100_vm0, %v79_v3  ;;  %187 = vmatpush.bf16.msra.mxu2 %v279_v13 }
  0x92   :  { %v113_v7 = vpop.f32.mrf.mxu0 }
  0x93   :  { %v114_v8 = vadd.f32 %v288_v6, %v113_v7 }
  0x95   :  { %v117_v9 = vmax.f32 %v114_v8, 0.0 }
  0x97   :  { %v118_v10 = vpack.c.bf16 %v117_v9, %v117_v9 }
  0x99   :  { %256 = vmatmul.msk.bf16.vlgmr.msra.gmra.mxu1 %vm100_vm0, %v118_v10 }
  0x9a   :  { %v115_v11 = vpop.f32.mrf.mxu0 }
 0x116   :  { %v151_v15 = vpop.f32.mrf.mxu1 }
 0x117   :  { %v152_v16 = vadd.f32 %v289_v14, %v151_v15 }
 0x119   :  { %v155_v17 = vmax.f32 %v152_v16, 0.0 }
 0x11b   :  { %v156_v18 = vpack.c.bf16 %v155_v17, %v155_v17 }
 0x11d   :  { %265 = vmatmul.msk.bf16.vlgmr.msra.gmra.mxu2 %vm100_vm0, %v156_v18 }
 0x11e   :  { %v153_v19 = vpop.f32.mrf.mxu1 }
 0x1a0   :  { %v189_v23 = vpop.f32.mrf.mxu2 }
 0x1a1   :  { %v190_v24 = vadd.f32 %v290_v22, %v189_v23 }
 0x1a3   :  { %v193_v25 = vmax.f32 %v190_v24, 0.0 }
 0x1a5   :  { %v194_v26 = vpack.c.bf16 %v193_v25, %v193_v25 }
 0x1a7   :  { %274 = vmatmul.msk.bf16.vlgmr.msra.gmra.mxu3 %vm100_vm0, %v194_v26 }
 0x1a8   :  { %v191_v27 = vpop.f32.mrf.mxu2 }
 0x22a   :  { %v227_v29 = vpop.f32.mrf.mxu3 }
 0x22b   :  { %v228_v30 = vadd.f32 %v291_v28, %v227_v29 }
 0x22d   :  { %232 = vst.msk [vmem:[%s472_s9] sm:$0xff] %vm231_vm1, %v228_v30 }
 0x232   :  { %v229_v31 = vpop.f32.mrf.mxu3 }
 0x233   :  { %237 = vsyncpa [#allocation3], 1 }
 0x234   :  { %238 = vsyncpa [#allocation5], 1 }

</bundles_post_ra>
